<compile_context>
chip_gen: v5e
topology: v5e:2x2
jax: 0.10.0
libtpu: 0.0.40
codegen_flags: <defaults>
</compile_context>

<pallas_src>
import functools

import jax
import jax.numpy as jnp
from jax.experimental import pallas as pl
from jax.experimental.pallas import tpu as pltpu


# ---------------------------------------------------------------------------
# Pallas kernel: scaled dot-product attention, `grp` (batch*head) slices/step.
# ---------------------------------------------------------------------------
def _sdpa_kernel(q_ref, k_ref, v_ref, o_ref, *attn_refs, temperature, mxu_dtype):
    """Blocks: q (G,Lq,D); k,v (G,Lk,D); o (Lq,G*D); attn (G,Lq,Lk) if present."""
    inv_temp = 1.0 / float(temperature)
    q = q_ref[...]
    k = k_ref[...]
    v = v_ref[...]
    if mxu_dtype is not None:
        # Opt-in: feed the bf16-native MXU even for f32 callers.
        q = q.astype(mxu_dtype)
        k = k.astype(mxu_dtype)
        v = v.astype(mxu_dtype)

    # Raw scores on the MXU (operands stay in input / mxu dtype), f32 accumulate.
    s = jnp.einsum("gqd,gkd->gqk", q, k,
                   preferred_element_type=jnp.float32)          # (G, Lq, Lk) f32

    # Numerically-stable softmax of s/temperature; the 1/temperature scale is
    # folded into the exp argument so matmul operands are never rescaled.
    m = jnp.max(s, axis=-1, keepdims=True)
    p = jnp.exp((s - m) * inv_temp)                             # unnormalized
    denom = jnp.sum(p, axis=-1, keepdims=True)
    inv_denom = pl.reciprocal(denom, approx=True)               # EUP vrcp, ~free

    if attn_refs:
        # Caller wants the attention matrix back -> normalize the full tile.
        attn = p * inv_denom
        o = jnp.einsum("gqk,gkd->gqd", attn.astype(v.dtype), v,
                       preferred_element_type=jnp.float32)      # (G, Lq, D) f32
        attn_refs[0][...] = attn.astype(attn_refs[0].dtype)
    else:
        # Hot path (attn discarded): normalize after P@V so the VPU multiply
        # acts on the (G, Lq, D) tile instead of the (G, Lq, Lk) tile.
        o = jnp.einsum("gqk,gkd->gqd", p.astype(v.dtype), v,
                       preferred_element_type=jnp.float32)
        o = o * inv_denom

    # Lane-dense store: concatenate the per-head (Lq, D) results along lanes
    # into a (Lq, G*D) slab so the output stores are full-width (G*D >= 128 for
    # the preferred group sizes).  G is a small static constant -> unrolls.
    o = o.astype(o_ref.dtype)
    g = o.shape[0]
    if g == 1:
        o_ref[...] = o[0]
    else:
        o_ref[...] = jnp.concatenate([o[i] for i in range(g)], axis=-1)


# ---------------------------------------------------------------------------
# Hardware / tiling heuristics.
# ---------------------------------------------------------------------------
def _tpu_hw_info():
    """(vmem_capacity_bytes, tensorcores sharing the grid) with safe fallbacks."""
    vmem_cap = 64 * 2**20          # conservative default: v7x has the least VMEM
    num_cores = 1
    try:
        info = pltpu.get_tpu_info()
        cap = getattr(info, "vmem_capacity_bytes", None)
        if cap:
            vmem_cap = int(cap)
    except Exception:
        pass
    try:
        kind = jax.devices()[0].device_kind.lower()
        # v7x (2 TCs/chip) and v4/v5p megacore shard "parallel" grid axes
        # across two cores -> prefer even grid splits there.
        if ("v7" in kind) or ("v4" in kind) or ("v5p" in kind):
            num_cores = 2
    except Exception:
        pass
    return vmem_cap, num_cores


def _working_set_bytes(g, lq, lk, d, itemsize, return_attn, attn_itemsize):
    """Per-grid-step VMEM footprint estimate for a head-group of size g."""
    io = 2 * g * (2 * lq * d + 2 * lk * d) * itemsize       # q,k,v,o blocks (dbl-buffered)
    if return_attn:
        io += 2 * g * lq * lk * attn_itemsize                # attn block (dbl-buffered)
    interm = g * (3 * lq * lk + lq * d) * 4                  # f32 score/prob/acc tiles
    return io + interm


def _choose_head_group(num_bh, lq, lk, d, itemsize, *, return_attn,
                       attn_itemsize, vmem_budget, num_cores, max_group=32):
    """How many (batch*head) slices to process per grid step.

    Priority: fit the VMEM budget > even grid splits on 2-core parts >
    lane-dense output width (g*d multiple of 128) > fewest grid steps.
    `max_group` bounds the static unroll of the lane-dense concat.
    """
    candidates = []
    for g in range(1, num_bh + 1):
        if num_bh % g or g > max_group:
            continue
        if g > 1 and _working_set_bytes(g, lq, lk, d, itemsize,
                                        return_attn, attn_itemsize) > vmem_budget:
            continue
        candidates.append(g)

    pool = candidates
    if num_cores >= 2:
        # Odd step counts leave one TensorCore partially idle.
        even = [g for g in pool if (num_bh // g) % num_cores == 0]
        if even:
            pool = even
    lane_dense = [g for g in pool if (g * d) % 128 == 0]
    if lane_dense:
        pool = lane_dense
    return max(pool)


# ---------------------------------------------------------------------------
# Wrapper around pallas_call.
# ---------------------------------------------------------------------------
def scaled_dot_product_attention(q, k, v, temperature, *, return_attn=True,
                                 attn_dtype=None, mxu_dtype=None):
    """q, k, v: (B, H, L, D) arrays. Returns out (and attn if return_attn)."""
    B, H, Lq, D = q.shape
    Lk = k.shape[2]
    assert k.shape == (B, H, Lk, D) and v.shape == (B, H, Lk, D)
    BH = B * H

    qf = q.reshape(BH, Lq, D)
    kf = k.reshape(BH, Lk, D)
    vf = v.reshape(BH, Lk, D)

    if attn_dtype is None:
        attn_dtype = q.dtype       # do not inflate attn to f32 for bf16 inputs
    itemsize = jnp.dtype(q.dtype).itemsize
    attn_itemsize = jnp.dtype(attn_dtype).itemsize

    vmem_cap, num_cores = _tpu_hw_info()
    # ~13/16 of physical VMEM (~52 MiB on v7x, ~104 MiB on v5e/v6e) leaves
    # headroom for compiler-internal scratch and the pipeline epilogue.
    vmem_limit = int(min(vmem_cap, max(32 * 2**20, (vmem_cap * 13) // 16)))
    vmem_budget = (vmem_limit * 3) // 4

    grp = _choose_head_group(BH, Lq, Lk, D, itemsize, return_attn=return_attn,
                             attn_itemsize=attn_itemsize,
                             vmem_budget=vmem_budget, num_cores=num_cores)
    n_steps = BH // grp
    grid = (n_steps,)

    blk_bytes = _working_set_bytes(grp, Lq, Lk, D, itemsize, return_attn,
                                   attn_itemsize)
    vmem_limit = int(min(vmem_cap, max(vmem_limit, 2 * blk_bytes)))

    kernel = functools.partial(_sdpa_kernel, temperature=float(temperature),
                               mxu_dtype=mxu_dtype)

    in_specs = [
        pl.BlockSpec((grp, Lq, D), lambda i: (i, 0, 0)),
        pl.BlockSpec((grp, Lk, D), lambda i: (i, 0, 0)),
        pl.BlockSpec((grp, Lk, D), lambda i: (i, 0, 0)),
    ]

    # Lane-dense output: one (Lq, grp*D) slab per grid step (leading dim squeezed).
    o_shape = jax.ShapeDtypeStruct((n_steps, Lq, grp * D), q.dtype)
    o_spec = pl.BlockSpec((None, Lq, grp * D), lambda i: (i, 0, 0))

    # Rough roofline numbers so XLA can schedule around the custom call.
    flops = 4 * BH * Lq * Lk * D
    transcendentals = BH * Lq * Lk
    bytes_accessed = (qf.size + kf.size + vf.size + BH * Lq * D) * itemsize

    if return_attn:
        out_shape = (o_shape, jax.ShapeDtypeStruct((BH, Lq, Lk), attn_dtype))
        out_specs = [o_spec, pl.BlockSpec((grp, Lq, Lk), lambda i: (i, 0, 0))]
        bytes_accessed += BH * Lq * Lk * attn_itemsize
    else:
        out_shape = o_shape
        out_specs = o_spec

    result = pl.pallas_call(
        kernel,
        out_shape=out_shape,
        grid_spec=pltpu.PrefetchScalarGridSpec(
            num_scalar_prefetch=0,
            grid=grid,
            in_specs=in_specs,
            out_specs=out_specs,
        ),
        compiler_params=pltpu.CompilerParams(
            dimension_semantics=("parallel",),
            vmem_limit_bytes=vmem_limit,
        ),
        cost_estimate=pl.CostEstimate(
            flops=int(flops),
            transcendentals=int(transcendentals),
            bytes_accessed=int(bytes_accessed),
        ),
    )(qf, kf, vf)

    if return_attn:
        out_flat, attn_flat = result
    else:
        out_flat = result

    # Un-interleave the lane-dense (Lq, grp*D) slabs back to (B, H, Lq, D).
    # Wrapper-side layout plumbing, outside the kernel's hot loop.
    out = (out_flat.reshape(n_steps, Lq, grp, D)
                   .transpose(0, 2, 1, 3)
                   .reshape(B, H, Lq, D))
    if return_attn:
        return out, attn_flat.reshape(B, H, Lq, Lk)
    return out


# ---------------------------------------------------------------------------
# Pure-JAX reference SDPA and the surrounding DiffAtten glue (eval mode).
# ---------------------------------------------------------------------------
def _sdpa_reference(q, k, v, temperature):
    s = jnp.einsum("bhqd,bhkd->bhqk", q / temperature, k)
    attn = jax.nn.softmax(s, axis=-1)
    out = jnp.einsum("bhqk,bhkd->bhqd", attn, v)
    return out, attn


def _layer_norm(x, eps):
    mu = jnp.mean(x, axis=-1, keepdims=True)
    var = jnp.mean(jnp.square(x - mu), axis=-1, keepdims=True)
    return (x - mu) * jax.lax.rsqrt(var + eps)


def multi_head_attention(p, q, k, v, *, n_head, d_k, d_v, use_pallas=True):
    B, Lq, _ = q.shape
    Lk, Lv = k.shape[1], v.shape[1]
    residual = q
    qh = (q @ p["w_qs"]).reshape(B, Lq, n_head, d_k).transpose(0, 2, 1, 3)
    kh = (k @ p["w_ks"]).reshape(B, Lk, n_head, d_k).transpose(0, 2, 1, 3)
    vh = (v @ p["w_vs"]).reshape(B, Lv, n_head, d_v).transpose(0, 2, 1, 3)
    temp = float(d_k) ** 0.5
    if use_pallas:
        # attn is discarded by the module -> skip that HBM writeback entirely.
        o = scaled_dot_product_attention(qh, kh, vh, temp, return_attn=False)
    else:
        o, _ = _sdpa_reference(qh, kh, vh, temp)
    o = o.transpose(0, 2, 1, 3).reshape(B, Lq, n_head * d_v)
    o = o @ p["w_fc"]
    o = o + residual              # dropout = identity (eval mode)
    return _layer_norm(o, eps=1e-6)


def diff_atten_forward(p, q_x, q_adj, v_x, v_adj, *, n_head, d_k, d_v,
                       nodes, max_diff_step, use_pallas=True):
    """DiffAtten.forward, diff_type='Attention', eval mode."""
    B = q_x.shape[0]
    residual = q_x
    q_x1 = jnp.einsum("bij,bjd->bid", q_adj, q_x)
    v_x1 = jnp.einsum("bij,bjd->bid", v_adj, v_x)
    q_cat = jnp.concatenate([q_x, q_x1], axis=1)
    v_cat = jnp.concatenate([v_x, v_x1], axis=1)
    for _ in range(2, max_diff_step):
        q_x2 = jnp.einsum("bij,bjd->bid", q_adj, q_x1)
        v_x2 = jnp.einsum("bij,bjd->bid", v_adj, v_x1)
        q_cat = jnp.concatenate([q_cat, q_x2], axis=1)
        v_cat = jnp.concatenate([v_cat, v_x2], axis=1)
        q_x1, v_x1 = q_x2, v_x2
    q_n = _layer_norm(q_cat, eps=1e-5)
    v_n = _layer_norm(v_cat, eps=1e-5)
    x = multi_head_attention(p["mha"], q_n, q_n, v_n, n_head=n_head,
                             d_k=d_k, d_v=d_v, use_pallas=use_pallas)
    x = jnp.mean(x.reshape(B, nodes, -1, max_diff_step), axis=-1)
    x1 = jax.nn.relu(x @ p["w_conv"] + p["b_conv"])   # dropout = identity
    x = residual + (x1 @ p["w_lin"] + p["b_lin"])
    return _layer_norm(x, eps=1e-5)


if __name__ == "__main__":
    # Small DiffAtten config: batch=2, nodes=8, d_in=16, 4 heads of d_k=d_v=32.
    B, nodes, d_in = 2, 8, 16
    n_head, d_k, d_v, d_out = 4, 32, 32, 24
    max_diff_step = 3

    key = jax.random.PRNGKey(0)
    keys = jax.random.split(key, 16)

    q_x = jax.random.normal(keys[0], (B, nodes, d_in), jnp.float32)
    v_x = jax.random.normal(keys[1], (B, nodes, d_in), jnp.float32)
    q_adj = jax.nn.softmax(jax.random.normal(keys[2], (B, nodes, nodes)), axis=-1)
    v_adj = jax.nn.softmax(jax.random.normal(keys[3], (B, nodes, nodes)), axis=-1)

    def _lin(k_, fan_in, fan_out):
        return jax.random.normal(k_, (fan_in, fan_out), jnp.float32) / (fan_in ** 0.5)

    params = {
        "mha": {
            "w_qs": _lin(keys[4], d_in, n_head * d_k),
            "w_ks": _lin(keys[5], d_in, n_head * d_k),
            "w_vs": _lin(keys[6], d_in, n_head * d_v),
            "w_fc": _lin(keys[7], n_head * d_v, d_in),
        },
        "w_conv": _lin(keys[8], d_in, d_out),
        "b_conv": 0.1 * jax.random.normal(keys[9], (d_out,), jnp.float32),
        "w_lin": _lin(keys[10], d_out, d_in),
        "b_lin": 0.1 * jax.random.normal(keys[11], (d_in,), jnp.float32),
    }

    # --- 1) direct check of the Pallas SDPA kernel (f32, attn returned) ------
    H, L, D = n_head, nodes * max_diff_step, d_k
    temp = float(d_k) ** 0.5
    qh = jax.random.normal(keys[12], (B, H, L, D), jnp.float32)
    kh = jax.random.normal(keys[13], (B, H, L, D), jnp.float32)
    vh = jax.random.normal(keys[14], (B, H, L, D), jnp.float32)

    out, attn = jax.block_until_ready(
        scaled_dot_product_attention(qh, kh, vh, temp, return_attn=True))
    ref_out, ref_attn = _sdpa_reference(qh, kh, vh, temp)
    # approx reciprocal in the kernel -> slightly relaxed tolerance
    assert jnp.allclose(out, ref_out, atol=2e-3, rtol=2e-3)
    assert jnp.allclose(attn, ref_attn, atol=2e-3, rtol=2e-3)

    # --- 2) bf16 path smoke test (operands stay bf16 on the MXU) -------------
    qb, kb, vb = (t.astype(jnp.bfloat16) for t in (qh, kh, vh))
    out_b = jax.block_until_ready(
        scaled_dot_product_attention(qb, kb, vb, temp, return_attn=False))
    ref_b, _ = _sdpa_reference(qb.astype(jnp.float32), kb.astype(jnp.float32),
                               vb.astype(jnp.float32), temp)
    assert jnp.allclose(out_b.astype(jnp.float32), ref_b, atol=1e-1, rtol=1e-1)

    # --- 3) opt-in bf16 MXU path for f32 inputs (f32 accumulation) -----------
    out_m = jax.block_until_ready(
        scaled_dot_product_attention(qh, kh, vh, temp, return_attn=False,
                                     mxu_dtype=jnp.bfloat16))
    assert jnp.allclose(out_m, ref_out, atol=5e-2, rtol=5e-2)

    # --- 4) full DiffAtten forward: Pallas SDPA inside vs pure-JAX -----------
    cfg = dict(n_head=n_head, d_k=d_k, d_v=d_v, nodes=nodes,
               max_diff_step=max_diff_step)
    y = jax.block_until_ready(
        diff_atten_forward(params, q_x, q_adj, v_x, v_adj, use_pallas=True, **cfg))
    y_ref = diff_atten_forward(params, q_x, q_adj, v_x, v_adj,
                               use_pallas=False, **cfg)
    assert y.shape == (B, nodes, d_in)
    assert jnp.allclose(y, y_ref, atol=5e-3, rtol=5e-3)

    print("KERNEL_OK")
</pallas_src>

<mosaic_0001>
module attributes {stable_mosaic.version = 11 : i64} {
  func.func @_sdpa_kernel(%arg0: i32, %arg1: memref<8x24x32xf32, #tpu.memory_space<vmem>>, %arg2: memref<8x24x32xf32, #tpu.memory_space<vmem>>, %arg3: memref<8x24x32xf32, #tpu.memory_space<vmem>>, %arg4: memref<1x24x256xf32, #tpu.memory_space<vmem>>, %arg5: memref<8x24x24xf32, #tpu.memory_space<vmem>>) attributes {dimension_semantics = [#tpu.dimension_semantics<parallel>], iteration_bounds = array<i64: 1>, scalar_prefetch = 0 : i64, scratch_operands = 0 : i64, tpu.core_type = #tpu.core_type<tc>, window_params = [{transform_indices = @transform_0, window_bounds = array<i64: 8, 24, 32>}, {transform_indices = @transform_1, window_bounds = array<i64: 8, 24, 32>}, {transform_indices = @transform_2, window_bounds = array<i64: 8, 24, 32>}, {transform_indices = @transform_3, window_bounds = array<i64: 1, 24, 256>}, {transform_indices = @transform_4, window_bounds = array<i64: 8, 24, 24>}]} {
    %c0 = arith.constant 0 : index
    %c0_0 = arith.constant 0 : index
    %c0_1 = arith.constant 0 : index
    %0 = vector.load %arg1[%c0, %c0_0, %c0_1] : memref<8x24x32xf32, #tpu.memory_space<vmem>>, vector<8x24x32xf32>
    %c0_2 = arith.constant 0 : index
    %c0_3 = arith.constant 0 : index
    %c0_4 = arith.constant 0 : index
    %1 = vector.load %arg2[%c0_2, %c0_3, %c0_4] : memref<8x24x32xf32, #tpu.memory_space<vmem>>, vector<8x24x32xf32>
    %c0_5 = arith.constant 0 : index
    %c0_6 = arith.constant 0 : index
    %c0_7 = arith.constant 0 : index
    %2 = vector.load %arg3[%c0_5, %c0_6, %c0_7] : memref<8x24x32xf32, #tpu.memory_space<vmem>>, vector<8x24x32xf32>
    "tpu.trace_start"() <{level = 10 : i32, message = "gqd,gkd->gqk"}> : () -> ()
    %cst = arith.constant dense<0.000000e+00> : vector<8x24x24xf32>
    %3 = tpu.matmul %0, %1, %cst {dimension_numbers = #tpu.dot_dimension_numbers<[2], [2], [1], [1], [0, 0, 0, 1, 1, 1], [0], [0]>} : vector<8x24x32xf32>, vector<8x24x32xf32>, vector<8x24x24xf32> -> vector<8x24x24xf32>
    "tpu.trace_stop"() : () -> ()
    %cst_8 = arith.constant dense<0xFF800000> : vector<8x24xf32>
    %4 = vector.multi_reduction <maximumf>, %3, %cst_8 [2] : vector<8x24x24xf32> to vector<8x24xf32>
    %5 = vector.shape_cast %4 : vector<8x24xf32> to vector<8x24x1xf32>
    %6 = vector.broadcast %5 : vector<8x24x1xf32> to vector<8x24x24xf32>
    %7 = arith.subf %3, %6 : vector<8x24x24xf32>
    %cst_9 = arith.constant 0.176776692 : f32
    %8 = vector.broadcast %cst_9 : f32 to vector<8x24x24xf32>
    %9 = arith.mulf %7, %8 : vector<8x24x24xf32>
    %10 = math.exp %9 : vector<8x24x24xf32>
    %cst_10 = arith.constant dense<0.000000e+00> : vector<8x24xf32>
    %11 = vector.multi_reduction <add>, %10, %cst_10 [2] : vector<8x24x24xf32> to vector<8x24xf32>
    %12 = vector.shape_cast %11 : vector<8x24xf32> to vector<8x24x1xf32>
    %13 = tpu.reciprocal %12 {approx = true} : vector<8x24x1xf32> -> vector<8x24x1xf32>
    %14 = vector.broadcast %13 : vector<8x24x1xf32> to vector<8x24x24xf32>
    %15 = arith.mulf %10, %14 : vector<8x24x24xf32>
    "tpu.trace_start"() <{level = 10 : i32, message = "gqk,gkd->gqd"}> : () -> ()
    %cst_11 = arith.constant dense<0.000000e+00> : vector<8x24x32xf32>
    %16 = tpu.matmul %15, %2, %cst_11 {dimension_numbers = #tpu.dot_dimension_numbers<[2], [1], [1], [2], [0, 0, 0, 1, 1, 2], [0], [0]>} : vector<8x24x24xf32>, vector<8x24x32xf32>, vector<8x24x32xf32> -> vector<8x24x32xf32>
    "tpu.trace_stop"() : () -> ()
    %c0_12 = arith.constant 0 : index
    %c0_13 = arith.constant 0 : index
    %c0_14 = arith.constant 0 : index
    %17 = vector.load %arg5[%c0_12, %c0_13, %c0_14] : memref<8x24x24xf32, #tpu.memory_space<vmem>>, vector<8x24x24xf32>
    tpu.vector_store %arg5[%c0_12, %c0_13, %c0_14], %15 {strides = array<i32>} : memref<8x24x24xf32, #tpu.memory_space<vmem>>, vector<8x24x24xf32>,
    %18 = vector.extract_strided_slice %16 {offsets = [0, 0, 0], sizes = [1, 24, 32], strides = [1, 1, 1]} : vector<8x24x32xf32> to vector<1x24x32xf32>
    %19 = vector.shape_cast %18 : vector<1x24x32xf32> to vector<24x32xf32>
    %20 = vector.extract_strided_slice %16 {offsets = [1, 0, 0], sizes = [1, 24, 32], strides = [1, 1, 1]} : vector<8x24x32xf32> to vector<1x24x32xf32>
    %21 = vector.shape_cast %20 : vector<1x24x32xf32> to vector<24x32xf32>
    %22 = vector.extract_strided_slice %16 {offsets = [2, 0, 0], sizes = [1, 24, 32], strides = [1, 1, 1]} : vector<8x24x32xf32> to vector<1x24x32xf32>
    %23 = vector.shape_cast %22 : vector<1x24x32xf32> to vector<24x32xf32>
    %24 = vector.extract_strided_slice %16 {offsets = [3, 0, 0], sizes = [1, 24, 32], strides = [1, 1, 1]} : vector<8x24x32xf32> to vector<1x24x32xf32>
    %25 = vector.shape_cast %24 : vector<1x24x32xf32> to vector<24x32xf32>
    %26 = vector.extract_strided_slice %16 {offsets = [4, 0, 0], sizes = [1, 24, 32], strides = [1, 1, 1]} : vector<8x24x32xf32> to vector<1x24x32xf32>
    %27 = vector.shape_cast %26 : vector<1x24x32xf32> to vector<24x32xf32>
    %28 = vector.extract_strided_slice %16 {offsets = [5, 0, 0], sizes = [1, 24, 32], strides = [1, 1, 1]} : vector<8x24x32xf32> to vector<1x24x32xf32>
    %29 = vector.shape_cast %28 : vector<1x24x32xf32> to vector<24x32xf32>
    %30 = vector.extract_strided_slice %16 {offsets = [6, 0, 0], sizes = [1, 24, 32], strides = [1, 1, 1]} : vector<8x24x32xf32> to vector<1x24x32xf32>
    %31 = vector.shape_cast %30 : vector<1x24x32xf32> to vector<24x32xf32>
    %32 = vector.extract_strided_slice %16 {offsets = [7, 0, 0], sizes = [1, 24, 32], strides = [1, 1, 1]} : vector<8x24x32xf32> to vector<1x24x32xf32>
    %33 = vector.shape_cast %32 : vector<1x24x32xf32> to vector<24x32xf32>
    %34 = tpu.concatenate %19, %21, %23, %25, %27, %29, %31, %33 in 1 : vector<24x32xf32>, vector<24x32xf32>, vector<24x32xf32>, vector<24x32xf32>, vector<24x32xf32>, vector<24x32xf32>, vector<24x32xf32>, vector<24x32xf32> -> vector<24x256xf32>
    %c0_15 = arith.constant 0 : index
    %c0_16 = arith.constant 0 : index
    %c0_17 = arith.constant 0 : index
    %35 = vector.load %arg4[%c0_15, %c0_16, %c0_17] : memref<1x24x256xf32, #tpu.memory_space<vmem>>, vector<1x24x256xf32>
    %36 = vector.shape_cast %35 : vector<1x24x256xf32> to vector<24x256xf32>
    %37 = vector.shape_cast %34 : vector<24x256xf32> to vector<1x24x256xf32>
    tpu.vector_store %arg4[%c0_15, %c0_16, %c0_17], %37 {strides = array<i32>} : memref<1x24x256xf32, #tpu.memory_space<vmem>>, vector<1x24x256xf32>,
    return
  }
  func.func @transform_0(%arg0: i32) -> (i32, i32, i32) {
    %c0_i32 = arith.constant 0 : i32
    %c0_i32_0 = arith.constant 0 : i32
    %c0_i32_1 = arith.constant 0 : i32
    return %arg0, %c0_i32, %c0_i32_0 : i32, i32, i32
  }
  func.func @transform_1(%arg0: i32) -> (i32, i32, i32) {
    %c0_i32 = arith.constant 0 : i32
    %c0_i32_0 = arith.constant 0 : i32
    %c0_i32_1 = arith.constant 0 : i32
    return %arg0, %c0_i32, %c0_i32_0 : i32, i32, i32
  }
  func.func @transform_2(%arg0: i32) -> (i32, i32, i32) {
    %c0_i32 = arith.constant 0 : i32
    %c0_i32_0 = arith.constant 0 : i32
    %c0_i32_1 = arith.constant 0 : i32
    return %arg0, %c0_i32, %c0_i32_0 : i32, i32, i32
  }
  func.func @transform_3(%arg0: i32) -> (i32, i32, i32) {
    %c0_i32 = arith.constant 0 : i32
    %c0_i32_0 = arith.constant 0 : i32
    %c0_i32_1 = arith.constant 0 : i32
    return %arg0, %c0_i32, %c0_i32_0 : i32, i32, i32
  }
  func.func @transform_4(%arg0: i32) -> (i32, i32, i32) {
    %c0_i32 = arith.constant 0 : i32
    %c0_i32_0 = arith.constant 0 : i32
    %c0_i32_1 = arith.constant 0 : i32
    return %arg0, %c0_i32, %c0_i32_0 : i32, i32, i32
  }
}

</mosaic_0001>

<bundles_post_ra>
// kernel: tpu_custom_call.1
= control target key start
LH: loop header
LB: loop body
LE: loop exit
PB: predicated region body
PF: predicated region fallthrough
CT: control target
= control target key end

     0   :  { %10 = vsyncpa [#allocation3], 0  ;;  %s1969_s0 = inlined_call_operand.hbm [shape: f32[8,24,32], index: 0, kind: input, shape index: {}]   ;;  %s1970_s1 = inlined_call_operand.hbm [shape: f32[8,24,32], index: 1, kind: input, shape index: {}]   ;;  %s1971_s2 = inlined_call_operand.hbm [shape: f32[8,24,32], index: 2, kind: input, shape index: {}]   ;;  %s1972_s3 = inlined_call_operand.hbm [shape: f32[1,24,256], index: 3, kind: output, shape index: {0}]   ;;  %s1973_s4 = inlined_call_operand.hbm [shape: f32[8,24,24], index: 4, kind: output, shape index: {1}]  }
   0x1   :  { %11 = vsyncpa [#allocation6], 0 }
   0x2   :  { %12 = vsyncpa [#allocation4], 0 }
   0x3   :  { %13 = vsyncpa [#allocation10], 0  ;;  %s31_s17 = sshll.u32 %s1970_s1, 4  ;;  %s1527_s18 = smov [#allocation5]   ;;  %s32_s17 = int_to_ptr.hbm [resolvable:$true] %s31_s17 }
   0x4   :  { %s33_s19 = sshll.u32 %s1527_s18, 4  ;;  %s18_s22 = sshll.u32 %s1969_s0, 4  ;;  %s34_s19 = int_to_ptr.vmem [resolvable:$true] %s33_s19  ;;  %s19_s22 = int_to_ptr.hbm [resolvable:$true] %s18_s22 }
   0x5   :  { %s1528_s23 = smov 128   ;;  %s1529_s24 = smov 8  }
   0x6   :  { %39 = dma.hbm_to_vmem [thread:$0]  %s32_s17, 3072, %s34_s19, [#allocation6], %s1528_s23, %s1528_s23, %s1529_s24  }
   0x7   :  { %s1530_s25 = smov [#allocation2]   ;;  %s44_s1 = sshll.u32 %s1971_s2, 4  ;;  %s45_s1 = int_to_ptr.hbm [resolvable:$true] %s44_s1 }
   0x8   :  { %s20_s26 = sshll.u32 %s1530_s25, 4  ;;  %s1531_s0 = smov [#allocation7]   ;;  %s21_s26 = int_to_ptr.vmem [resolvable:$true] %s20_s26 }
   0x9   :  { %26 = dma.hbm_to_vmem [thread:$0]  %s19_s22, 3072, %s21_s26, [#allocation3], %s1528_s23, %s1528_s23, %s1529_s24  }
   0xa   :  { %s46_s29 = sshll.u32 %s1531_s0, 4  ;;  %s47_s29 = int_to_ptr.vmem [resolvable:$true] %s46_s29 }
   0xb   :  { %52 = dma.hbm_to_vmem [thread:$0]  %s45_s1, 3072, %s47_s29, [#allocation6], %s1528_s23, %s1528_s23, %s1529_s24  }
   0xc   :  { %1519 = dma.done.wait [#allocation3], 3072  }
   0xd   :  { %1520 = vsyncadd [#allocation3], 4294964224 }
   0xe   :  { %1521 = dma.done.wait [#allocation6], 6144  }
   0xf   :  { %1522 = vsyncadd [#allocation6], 4294961152  ;;  %vm137_vm0 = vcmask 261120   ;;  %v94_v0 = vld [vmem:[#allocation5 + $0x28] sm:$0xff]  ;;  %v97_v1 = vld [vmem:[#allocation5 + $0x40] sm:$0xff]  ;;  %vm490_vm1 = vcmask 195584  }
  0x10   :  { %v100_v2 = vld [vmem:[#allocation5 + $0x58] sm:$0xff]  ;;  %1225 = vmatpush.xpose.msk.msra.mxu1 %vm137_vm0, %v94_v0  ;;  %1231 = vmatpush.xpose.msk.msra.mxu2 %vm137_vm0, %v97_v1  ;;  %v93_v3 = vld [vmem:[#allocation5 + $0x20] sm:$0xff]  ;;  %v99_v5 = vld [vmem:[#allocation5 + $0x50] sm:$0xff]  ;;  %s1532_s2 = smov 32   ;;  %s1533_s30 = smov 64   ;;  %vm1158_vm2 = vcmask 523264  }
  0x11   :  { %1237 = vmatpush.xpose.msk.msra.mxu3 %vm137_vm0, %v100_v2  ;;  %v96_v4 = vld [vmem:[#allocation5 + $0x38] sm:$0xff]  ;;  %v91_v6 = vld [vmem:[#allocation5 + $0x10] sm:$0xff]  ;;  %v98_v9 = vld [vmem:[#allocation5 + $0x48] sm:$0xff]  ;;  %s1534_s5 = smov 96   ;;  %s1535_s6 = smov [#allocation9]   ;;  %vm1162_vm3 = vcmask 785408  }
  0x12   :  { %v92_v7 = vld [vmem:[#allocation5 + $0x18] sm:$0xff]  ;;  %v95_v8 = vld [vmem:[#allocation5 + $0x30] sm:$0xff]  ;;  %1219 = vmatpush.xpose.msk.msra.mxu0 %vm137_vm0, %v91_v6  ;;  %v109_v10 = vld [vmem:[#allocation5 + $0xa0] sm:$0xff]  ;;  %s1198_s7 = sshll.u32 %s1535_s6, 4  ;;  %s1200_s10 = sshll.u32 %s1973_s4, 4  ;;  %s1199_s7 = int_to_ptr.vmem [resolvable:$true] %s1198_s7  ;;  %s1201_s10 = int_to_ptr.hbm [resolvable:$true] %s1200_s10 }
  0x13   :  { %v90_v11 = vld [vmem:[#allocation5 + $0x8] sm:$0xff]  ;;  %v68_v13 = vld [vmem:[#allocation2 + $0x18] sm:$0xff]  ;;  %v71_v14 = vld [vmem:[#allocation2 + $0x30] sm:$0xff]  ;;  %s1536_s4 = smov [#allocation8]   ;;  %s1187_s14 = sshll.u32 %s1972_s3, 4  ;;  %s1188_s14 = int_to_ptr.hbm [resolvable:$true] %s1187_s14 }
  0x14   :  { %1226 = vmatpush.xpose.msk.msra.mxu1 %vm137_vm0, %v93_v3  ;;  %1232 = vmatpush.xpose.msk.msra.mxu2 %vm137_vm0, %v96_v4  ;;  %v106_v12 = vld [vmem:[#allocation5 + $0x88] sm:$0xff]  ;;  %v108_v16 = vld [vmem:[#allocation5 + $0x98] sm:$0xff]  ;;  %v89_v18 = vld [vmem:[#allocation5] sm:$0xff]  ;;  %s1185_s11 = sshll.u32 %s1536_s4, 4  ;;  %s1537_s15 = smov 256   ;;  %s1186_s11 = int_to_ptr.vmem [resolvable:$true] %s1185_s11 }
  0x15   :  { %1238 = vmatpush.xpose.msk.msra.mxu3 %vm137_vm0, %v99_v5  ;;  %v74_v15 = vld [vmem:[#allocation2 + $0x48] sm:$0xff]  ;;  %v112_v17 = vld [vmem:[#allocation5 + $0xb8] sm:$0xff]  ;;  %v105_v19 = vld [vmem:[#allocation5 + $0x80] sm:$0xff]  ;;  %s1538_s16 = smov 16  }
  0x16   :  { %1220 = vmatpush.xpose.msk.msra.mxu0 %vm137_vm0, %v90_v11  ;;  %v65_v20 = vld [vmem:[#allocation2] sm:$0xff]  ;;  %v107_v21 = vld [vmem:[#allocation5 + $0x90] sm:$0xff]  ;;  %v104_v23 = vld [vmem:[#allocation5 + $0x78] sm:$0xff] }
  0x17   :  { %v111_v22 = vld [vmem:[#allocation5 + $0xb0] sm:$0xff]  ;;  %v69_v24 = vld [vmem:[#allocation2 + $0x20] sm:$0xff]  ;;  %v72_v25 = vld [vmem:[#allocation2 + $0x38] sm:$0xff] }
  0x18   :  { %1227 = vmatpush.xpose.msk.msra.mxu1 %vm137_vm0, %v92_v7  ;;  %1233 = vmatpush.xpose.msk.msra.mxu2 %vm137_vm0, %v95_v8  ;;  %v75_v26 = vld [vmem:[#allocation2 + $0x50] sm:$0xff]  ;;  %v110_v27 = vld [vmem:[#allocation5 + $0xa8] sm:$0xff]  ;;  %v73_v31 = vld [vmem:[#allocation2 + $0x40] sm:$0xff] }
  0x19   :  { %1239 = vmatpush.xpose.msk.msra.mxu3 %vm137_vm0, %v98_v9  ;;  %v103_v28 = vld [vmem:[#allocation5 + $0x70] sm:$0xff]  ;;  %v66_v29 = vld [vmem:[#allocation2 + $0x8] sm:$0xff]  ;;  %v76_v33 = vld [vmem:[#allocation2 + $0x58] sm:$0xff] }
  0x1a   :  { %1221 = vmatpush.xpose.msk.msra.mxu0 %vm137_vm0, %v89_v18  ;;  %v102_v30 = vld [vmem:[#allocation5 + $0x68] sm:$0xff]  ;;  %v101_v34 = vld [vmem:[#allocation5 + $0x60] sm:$0xff]  ;;  %v67_v35 = vld [vmem:[#allocation2 + $0x10] sm:$0xff] }
  0x1b   :  { %1228 = vmatmul.msk.f32.vlgmr.msra.gmra.mxu1 %vm137_vm0, %v68_v13  ;;  %1234 = vmatmul.msk.f32.vlgmr.msra.gmra.mxu2 %vm137_vm0, %v71_v14  ;;  %v70_v32 = vld [vmem:[#allocation2 + $0x28] sm:$0xff]  ;;  %v83_v36 = vld [vmem:[#allocation2 + $0x90] sm:$0xff]  ;;  %v80_v37 = vld [vmem:[#allocation2 + $0x78] sm:$0xff] }
  0x1c   :  { %1255 = vmatpush.xpose.msk.msrb.mxu2 %vm137_vm0, %v109_v10  ;;  %1249 = vmatpush.xpose.msk.msrb.mxu1 %vm137_vm0, %v106_v12  ;;  %v86_v38 = vld [vmem:[#allocation2 + $0xa8] sm:$0xff]  ;;  %v77_v39 = vld [vmem:[#allocation2 + $0x60] sm:$0xff]  ;;  %v84_v40 = vld [vmem:[#allocation2 + $0x98] sm:$0xff] }
  0x1d   :  { %1240 = vmatmul.msk.f32.vlgmr.msra.gmra.mxu3 %vm137_vm0, %v74_v15  ;;  %1222 = vmatmul.msk.f32.vlgmr.msra.gmra.mxu0 %vm137_vm0, %v65_v20  ;;  %v81_v41 = vld [vmem:[#allocation2 + $0x80] sm:$0xff]  ;;  %v87_v42 = vld [vmem:[#allocation2 + $0xb0] sm:$0xff]  ;;  %v82_v43 = vld [vmem:[#allocation2 + $0x88] sm:$0xff] }
  0x1e   :  { %1261 = vmatpush.xpose.msk.msrb.mxu3 %vm137_vm0, %v112_v17  ;;  %1243 = vmatpush.xpose.msk.msrb.mxu0 %vm137_vm0, %v103_v28  ;;  %v85_v44 = vld [vmem:[#allocation2 + $0xa0] sm:$0xff]  ;;  %v88_v45 = vld [vmem:[#allocation2 + $0xb8] sm:$0xff]  ;;  %v78_v48 = vld [vmem:[#allocation2 + $0x68] sm:$0xff] }
  0x1f   :  { %v79_v62 = vld [vmem:[#allocation2 + $0x70] sm:$0xff] }
  0x20   :  { %1256 = vmatpush.xpose.msk.msrb.mxu2 %vm137_vm0, %v108_v16  ;;  %1250 = vmatpush.xpose.msk.msrb.mxu1 %vm137_vm0, %v105_v19 }
  0x22   :  { %1262 = vmatpush.xpose.msk.msrb.mxu3 %vm137_vm0, %v111_v22  ;;  %1244 = vmatpush.xpose.msk.msrb.mxu0 %vm137_vm0, %v102_v30 }
  0x23   :  { %1229 = vmatmul.msk.f32.gmra.mxu1 %vm137_vm0, %v69_v24  ;;  %1235 = vmatmul.msk.f32.gmra.mxu2 %vm137_vm0, %v72_v25 }
  0x24   :  { %1257 = vmatpush.xpose.msk.msrb.mxu2 %vm137_vm0, %v107_v21  ;;  %1251 = vmatpush.xpose.msk.msrb.mxu1 %vm137_vm0, %v104_v23 }
  0x25   :  { %1241 = vmatmul.msk.f32.gmra.mxu3 %vm137_vm0, %v75_v26  ;;  %1223 = vmatmul.msk.f32.gmra.mxu0 %vm137_vm0, %v66_v29 }
  0x26   :  { %1263 = vmatpush.xpose.msk.msrb.mxu3 %vm137_vm0, %v110_v27  ;;  %1245 = vmatpush.xpose.msk.msrb.mxu0 %vm137_vm0, %v101_v34 }
  0x2b   :  { %1236 = vmatmul.msk.f32.gmra.mxu2 %vm137_vm0, %v73_v31  ;;  %1230 = vmatmul.msk.f32.gmra.mxu1 %vm137_vm0, %v70_v32 }
  0x2d   :  { %1242 = vmatmul.msk.f32.gmra.mxu3 %vm137_vm0, %v76_v33  ;;  %1224 = vmatmul.msk.f32.gmra.mxu0 %vm137_vm0, %v67_v35 }
  0x33   :  { %1258 = vmatmul.msk.f32.vlgmr.msrb.gmra.mxu2 %vm137_vm0, %v83_v36  ;;  %1252 = vmatmul.msk.f32.vlgmr.msrb.gmra.mxu1 %vm137_vm0, %v80_v37 }
  0x35   :  { %1264 = vmatmul.msk.f32.vlgmr.msrb.gmra.mxu3 %vm137_vm0, %v86_v38  ;;  %1246 = vmatmul.msk.f32.vlgmr.msrb.gmra.mxu0 %vm137_vm0, %v77_v39 }
  0x3b   :  { %1259 = vmatmul.msk.f32.gmra.mxu2 %vm137_vm0, %v84_v40  ;;  %1253 = vmatmul.msk.f32.gmra.mxu1 %vm137_vm0, %v81_v41 }
  0x3d   :  { %1265 = vmatmul.msk.f32.gmra.mxu3 %vm137_vm0, %v87_v42  ;;  %1247 = vmatmul.msk.f32.gmra.mxu0 %vm137_vm0, %v78_v48 }
  0x43   :  { %1254 = vmatmul.msk.f32.gmra.mxu1 %vm137_vm0, %v82_v43  ;;  %1260 = vmatmul.msk.f32.gmra.mxu2 %vm137_vm0, %v85_v44 }
  0x45   :  { %1266 = vmatmul.msk.f32.gmra.mxu3 %vm137_vm0, %v88_v45  ;;  %1248 = vmatmul.msk.f32.gmra.mxu0 %vm137_vm0, %v79_v62 }
  0x98   :  { %v1628_v46 = vpop.f32.mrf.mxu1 }
  0x99   :  { %v500_v47 = vsel %vm490_vm1, %v1628_v46, -inf }
  0x9a   :  { %501 = vmax.xlane.f32.xlu1 %v500_v47  ;;  %v1641_v53 = vpop.f32.mrf.mxu0 }
  0x9b   :  { %v491_v4 = vsel %vm490_vm1, %v1641_v53, -inf }
  0x9e   :  { %v1633_v49 = vpop.f32.mrf.mxu2 }
  0x9f   :  { %v509_v51 = vsel %vm490_vm1, %v1633_v49, -inf }
  0xa0   :  { %v1635_v50 = vpop.f32.mrf.mxu3  ;;  %510 = vmax.xlane.f32.xlu0 %v509_v51  ;;  %v1639_v52 = vpop.f32.mrf.mxu1 }
  0xa1   :  { %v503_v54 = vsel %vm490_vm1, %v1639_v52, -inf  ;;  %v518_v57 = vsel %vm490_vm1, %v1635_v50, -inf }
  0xa2   :  { %504 = vmax.xlane.f32.xlu2 %v503_v54  ;;  %v1657_v61 = vpop.f32.mrf.mxu0 }
  0xa3   :  { %v494_v63 = vsel %vm490_vm1, %v1657_v61, -inf }
  0xa6   :  { %v1645_v55 = vpop.f32.mrf.mxu2 }
  0xa7   :  { %v512_v58 = vsel %vm490_vm1, %v1645_v55, -inf }
  0xa8   :  { %v1647_v56 = vpop.f32.mrf.mxu3  ;;  %519 = vmax.xlane.f32.xlu0 %v518_v57  ;;  %513 = vmax.xlane.f32.xlu1 %v512_v58  ;;  %v1655_v60 = vpop.f32.mrf.mxu1 }
  0xa9   :  { %v521_v59 = vsel %vm490_vm1, %v1647_v56, -inf  ;;  %v506_v10 = vsel %vm490_vm1, %v1655_v60, -inf }
  0xaa   :  { %522 = vmax.xlane.f32.xlu2 %v521_v59  ;;  %v1700_v19 = vpop.f32.mrf.mxu0 }
  0xab   :  { %v497_v25 = vsel %vm490_vm1, %v1700_v19, -inf }
  0xae   :  { %v1662_v0 = vpop.f32.mrf.mxu2 }
  0xaf   :  { %v515_v1 = vsel %vm490_vm1, %v1662_v0, -inf }
  0xb0   :  { %v1666_v2 = vpop.f32.mrf.mxu3  ;;  %516 = vmax.xlane.f32.xlu0 %v515_v1  ;;  %495 = vmax.xlane.f32.xlu1 %v494_v63  ;;  %v1668_v3 = vpop.f32.mrf.mxu1 }
  0xb1   :  { %v524_v5 = vsel %vm490_vm1, %v1666_v2, -inf  ;;  %v536_v15 = vsel %vm490_vm1, %v1668_v3, -inf }
  0xb2   :  { %492 = vmax.xlane.f32.xlu2 %v491_v4  ;;  %v1714_v26 = vpop.f32.mrf.mxu0 }
  0xb3   :  { %v527_v27 = vsel %vm490_vm1, %v1714_v26, -inf }
  0xb6   :  { %v1674_v6 = vpop.f32.mrf.mxu2 }
  0xb7   :  { %v545_v7 = vsel %vm490_vm1, %v1674_v6, -inf }
  0xb8   :  { %v1678_v8 = vpop.f32.mrf.mxu3  ;;  %546 = vmax.xlane.f32.xlu0 %v545_v7  ;;  %525 = vmax.xlane.f32.xlu1 %v524_v5  ;;  %v1680_v9 = vpop.f32.mrf.mxu1 }
  0xb9   :  { %v554_v11 = vsel %vm490_vm1, %v1678_v8, -inf  ;;  %v539_v20 = vsel %vm490_vm1, %v1680_v9, -inf }
  0xba   :  { %507 = vmax.xlane.f32.xlu2 %v506_v10 }
  0xbe   :  { %v1686_v12 = vpop.f32.mrf.mxu2 }
  0xbf   :  { %v548_v13 = vsel %vm490_vm1, %v1686_v12, -inf }
  0xc0   :  { %549 = vmax.xlane.f32.xlu0 %v548_v13  ;;  %555 = vmax.xlane.f32.xlu1 %v554_v11  ;;  %v1690_v14 = vpop.f32.mrf.mxu3  ;;  %v1694_v16 = vpop.f32.mrf.mxu1 }
  0xc1   :  { %v542_v17 = vsel %vm490_vm1, %v1694_v16, -inf  ;;  %v557_v18 = vsel %vm490_vm1, %v1690_v14, -inf }
  0xc2   :  { %537 = vmax.xlane.f32.xlu2 %v536_v15 }
  0xc6   :  { %v1704_v21 = vpop.f32.mrf.mxu2 }
  0xc7   :  { %v551_v23 = vsel %vm490_vm1, %v1704_v21, -inf }
  0xc8   :  { %543 = vmax.xlane.f32.xlu0 %v542_v17  ;;  %558 = vmax.xlane.f32.xlu1 %v557_v18  ;;  %v1706_v22 = vpop.f32.mrf.mxu3 }
  0xc9   :  { %v560_v24 = vsel %vm490_vm1, %v1706_v22, -inf }
  0xca   :  { %540 = vmax.xlane.f32.xlu2 %v539_v20 }
  0xd0   :  { %552 = vmax.xlane.f32.xlu0 %v551_v23  ;;  %561 = vmax.xlane.f32.xlu1 %v560_v24 }
  0xd2   :  { %498 = vmax.xlane.f32.xlu2 %v497_v25 }
  0xd8   :  { %528 = vmax.xlane.f32.xlu0 %v527_v27 }
 0x10d   :  { %v502_v28 = vpop.xlane.xlu1 %501 }
 0x10e   :  { %v566_v29 = vsub.f32 %v1628_v46, %v502_v28 }
 0x110   :  { %v590_v30 = vmul.f32 0.17677669, %v566_v29 }
 0x112   :  { %v617_v31 = vmul.f32 1.442695, %v590_v30 }
 0x113   :  { %v511_v32 = vpop.xlane.xlu0 %510 }
 0x114   :  { %1303 = vpow2.f32 %v617_v31  ;;  %v569_v33 = vsub.f32 %v1633_v49, %v511_v32 }
 0x115   :  { %v505_v34 = vpop.xlane.xlu2 %504 }
 0x116   :  { %v593_v35 = vmul.f32 0.17677669, %v569_v33  ;;  %v567_v36 = vsub.f32 %v1639_v52, %v505_v34 }
 0x118   :  { %v623_v37 = vmul.f32 1.442695, %v593_v35  ;;  %v591_v38 = vmul.f32 0.17677669, %v567_v36 }
 0x11a   :  { %v1721_v39 = vpop.eup %1303  ;;  %1305 = vpow2.f32 %v623_v37  ;;  %v619_v43 = vmul.f32 1.442695, %v591_v38 }
 0x11b   :  { %v520_v40 = vpop.xlane.xlu0 %519  ;;  %v514_v41 = vpop.xlane.xlu1 %513  ;;  %v668_v42 = vsel %vm490_vm1, %v1721_v39, 0.0 }
 0x11c   :  { %v572_v44 = vsub.f32 %v1635_v50, %v520_v40  ;;  %v570_v45 = vsub.f32 %v1645_v55, %v514_v41  ;;  %669 = vadd.xlane.f32.xlu1 %v668_v42  ;;  %1307 = vpow2.f32 %v619_v43  ;;  %v1763_v40 = vpop.f32.mrf.mxu0 }
 0x11d   :  { %v523_v46 = vpop.xlane.xlu2 %522 }
 0x11e   :  { %v596_v47 = vmul.f32 0.17677669, %v572_v44  ;;  %v573_v48 = vsub.f32 %v1647_v56, %v523_v46  ;;  %v594_v52 = vmul.f32 0.17677669, %v570_v45  ;;  %v530_v44 = vsel %vm490_vm1, %v1763_v40, -inf }
 0x120   :  { %v1728_v49 = vpop.eup %1305  ;;  %v629_v51 = vmul.f32 1.442695, %v596_v47  ;;  %v597_v54 = vmul.f32 0.17677669, %v573_v48  ;;  %v625_v55 = vmul.f32 1.442695, %v594_v52 }
 0x121   :  { %v677_v57 = vsel %vm490_vm1, %v1728_v49, 0.0 }
 0x122   :  { %1309 = vpow2.f32 %v629_v51  ;;  %v631_v58 = vmul.f32 1.442695, %v597_v54  ;;  %678 = vadd.xlane.f32.xlu2 %v677_v57  ;;  %v1737_v63 = vpop.eup %1307 }
 0x123   :  { %v517_v50 = vpop.xlane.xlu0 %516  ;;  %v1732_v59 = vpop.xlane.xlu1 %495  ;;  %v671_v7 = vsel %vm490_vm1, %v1737_v63, 0.0 }
 0x124   :  { %1311 = vpow2.f32 %v631_v58  ;;  %v571_v62 = vsub.f32 %v1662_v0, %v517_v50 }
 0x125   :  { %v1735_v56 = vpop.xlane.xlu2 %492  ;;  %1313 = vpow2.f32 %v625_v55 }
 0x126   :  { %v595_v1 = vmul.f32 0.17677669, %v571_v62 }
 0x128   :  { %v1739_v4 = vpop.eup %1309  ;;  %v627_v5 = vmul.f32 1.442695, %v595_v1 }
 0x129   :  { %v686_v10 = vsel %vm490_vm1, %v1739_v4, 0.0 }
 0x12a   :  { %v1745_v11 = vpop.eup %1311  ;;  %1315 = vpow2.f32 %v627_v5  ;;  %672 = vadd.xlane.f32.xlu2 %v671_v7  ;;  %687 = vadd.xlane.f32.xlu0 %v686_v10 }
 0x12b   :  { %v547_v0 = vpop.xlane.xlu0 %546  ;;  %v526_v13 = vpop.xlane.xlu1 %525  ;;  %v689_v15 = vsel %vm490_vm1, %v1745_v11, 0.0 }
 0x12c   :  { %v574_v17 = vsub.f32 %v1666_v2, %v526_v13  ;;  %690 = vadd.xlane.f32.xlu1 %v689_v15  ;;  %v581_v18 = vsub.f32 %v1674_v6, %v547_v0  ;;  %v1751_v23 = vpop.eup %1313 }
 0x12d   :  { %v508_v20 = vpop.xlane.xlu2 %507  ;;  %v680_v31 = vsel %vm490_vm1, %v1751_v23, 0.0 }
 0x12e   :  { %v598_v24 = vmul.f32 0.17677669, %v574_v17  ;;  %v568_v25 = vsub.f32 %v1655_v60, %v508_v20  ;;  %v605_v30 = vmul.f32 0.17677669, %v581_v18  ;;  %v563_v18 = vsub.f32 %v1641_v53, %v1735_v56 }
 0x130   :  { %v1754_v27 = vpop.eup %1315  ;;  %v633_v28 = vmul.f32 1.442695, %v598_v24  ;;  %v592_v29 = vmul.f32 0.17677669, %v568_v25  ;;  %v647_v60 = vmul.f32 1.442695, %v605_v30 }
 0x131   :  { %v683_v6 = vsel %vm490_vm1, %v1754_v27, 0.0 }
 0x132   :  { %v621_v32 = vmul.f32 1.442695, %v592_v29  ;;  %681 = vadd.xlane.f32.xlu0 %v680_v31  ;;  %1317 = vpow2.f32 %v633_v28 }
 0x133   :  { %v550_v2 = vpop.xlane.xlu0 %549  ;;  %v556_v33 = vpop.xlane.xlu1 %555 }
 0x134   :  { %1319 = vpow2.f32 %v621_v32  ;;  %v584_v34 = vsub.f32 %v1678_v8, %v556_v33  ;;  %684 = vadd.xlane.f32.xlu1 %v683_v6  ;;  %v582_v36 = vsub.f32 %v1686_v12, %v550_v2  ;;  %v587_v32 = vmul.f32 0.17677669, %v563_v18  ;;  %v122_v18 = vld [vmem:[#allocation7 + $0x48] sm:$0xff] }
 0x135   :  { %v538_v35 = vpop.xlane.xlu2 %537  ;;  %1321 = vpow2.f32 %v647_v60 }
 0x136   :  { %v608_v37 = vmul.f32 0.17677669, %v584_v34  ;;  %v578_v38 = vsub.f32 %v1668_v3, %v538_v35  ;;  %v606_v8 = vmul.f32 0.17677669, %v582_v36  ;;  %v611_v34 = vmul.f32 1.442695, %v587_v32 }
 0x138   :  { %v653_v41 = vmul.f32 1.442695, %v608_v37  ;;  %v602_v42 = vmul.f32 0.17677669, %v578_v38  ;;  %v1765_v43 = vpop.eup %1317  ;;  %v649_v54 = vmul.f32 1.442695, %v606_v8 }
 0x139   :  { %v692_v12 = vsel %vm490_vm1, %v1765_v43, 0.0 }
 0x13a   :  { %v1769_v45 = vpop.eup %1319  ;;  %v641_v46 = vmul.f32 1.442695, %v602_v42  ;;  %1323 = vpow2.f32 %v653_v41  ;;  %693 = vadd.xlane.f32.xlu2 %v692_v12 }
 0x13b   :  { %v544_v3 = vpop.xlane.xlu0 %543  ;;  %v559_v47 = vpop.xlane.xlu1 %558  ;;  %v674_v48 = vsel %vm490_vm1, %v1769_v45, 0.0 }
 0x13c   :  { %1325 = vpow2.f32 %v641_v46  ;;  %v585_v51 = vsub.f32 %v1690_v14, %v559_v47  ;;  %675 = vadd.xlane.f32.xlu0 %v674_v48  ;;  %531 = vmax.xlane.f32.xlu1 %v530_v44  ;;  %v1777_v50 = vpop.eup %1321  ;;  %v564_v14 = vsub.f32 %v1657_v61, %v1732_v59  ;;  %v1795_v59 = vpop.f32.mrf.mxu0  ;;  %v580_v20 = vsub.f32 %v1694_v16, %v544_v3 }
 0x13d   :  { %v541_v52 = vpop.xlane.xlu2 %540  ;;  %1327 = vpow2.f32 %v649_v54  ;;  %v713_v7 = vsel %vm490_vm1, %v1777_v50, 0.0 }
 0x13e   :  { %v609_v57 = vmul.f32 0.17677669, %v585_v51  ;;  %v579_v58 = vsub.f32 %v1680_v9, %v541_v52  ;;  %v588_v28 = vmul.f32 0.17677669, %v564_v14  ;;  %v604_v53 = vmul.f32 0.17677669, %v580_v20 }
 0x13f   :  { %v117_v14 = vld [vmem:[#allocation7 + $0x20] sm:$0xff] }
 0x140   :  { %v655_v55 = vmul.f32 1.442695, %v609_v57  ;;  %v1779_v62 = vpop.eup %1323  ;;  %v603_v1 = vmul.f32 0.17677669, %v579_v58  ;;  %v613_v6 = vmul.f32 1.442695, %v588_v28 }
 0x141   :  { %v722_v9 = vsel %vm490_vm1, %v1779_v62, 0.0  ;;  %v645_v35 = vmul.f32 1.442695, %v604_v53  ;;  %v130_v28 = vld [vmem:[#allocation7 + $0x88] sm:$0xff] }
 0x142   :  { %v1781_v5 = vpop.eup %1325  ;;  %1329 = vpow2.f32 %v655_v55  ;;  %714 = vadd.xlane.f32.xlu2 %v713_v7  ;;  %v643_v61 = vmul.f32 1.442695, %v603_v1  ;;  %v118_v7 = vld [vmem:[#allocation7 + $0x28] sm:$0xff] }
 0x143   :  { %v553_v10 = vpop.xlane.xlu0 %552  ;;  %v562_v0 = vpop.xlane.xlu1 %561  ;;  %v704_v13 = vsel %vm490_vm1, %v1781_v5, 0.0  ;;  %836 = vmatpush.msra.mxu1 %v118_v7  ;;  %v114_v7 = vld [vmem:[#allocation7 + $0x8] sm:$0xff] }
 0x144   :  { %v583_v15 = vsub.f32 %v1704_v21, %v553_v10  ;;  %v586_v17 = vsub.f32 %v1706_v22, %v562_v0  ;;  %723 = vadd.xlane.f32.xlu0 %v722_v9  ;;  %705 = vadd.xlane.f32.xlu1 %v704_v13  ;;  %v1798_v29 = vpop.eup %1327  ;;  %v533_v21 = vsel %vm490_vm1, %v1795_v59, -inf  ;;  %1331 = vpow2.f32 %v643_v61  ;;  %v116_v10 = vld [vmem:[#allocation7 + $0x18] sm:$0xff]  ;;  %v121_v0 = vld [vmem:[#allocation7 + $0x40] sm:$0xff]  ;;  %v119_v13 = vld [vmem:[#allocation7 + $0x30] sm:$0xff] }
 0x145   :  { %v499_v56 = vpop.xlane.xlu2 %498  ;;  %v716_v2 = vsel %vm490_vm1, %v1798_v29, 0.0  ;;  %837 = vmatpush.msra.mxu1 %v117_v14  ;;  %871 = vmatpush.msra.mxu2 %v121_v0  ;;  %v120_v9 = vld [vmem:[#allocation7 + $0x38] sm:$0xff]  ;;  %v133_v61 = vld [vmem:[#allocation7 + $0xa0] sm:$0xff] }
 0x146   :  { %v607_v24 = vmul.f32 0.17677669, %v583_v15  ;;  %v610_v25 = vmul.f32 0.17677669, %v586_v17  ;;  %v565_v60 = vsub.f32 %v1700_v19, %v499_v56  ;;  %v124_v15 = vld [vmem:[#allocation7 + $0x58] sm:$0xff]  ;;  %v123_v17 = vld [vmem:[#allocation7 + $0x50] sm:$0xff] }
 0x147   :  { %838 = vmatpush.msra.mxu1 %v116_v10  ;;  %872 = vmatpush.msra.mxu2 %v120_v9 }
 0x148   :  { %v651_v30 = vmul.f32 1.442695, %v607_v24  ;;  %v657_v31 = vmul.f32 1.442695, %v610_v25  ;;  %v1802_v22 = vpop.eup %1329  ;;  %v589_v42 = vmul.f32 0.17677669, %v565_v60  ;;  %906 = vmatpush.msra.mxu3 %v124_v15 }
 0x149   :  { %v725_v33 = vsel %vm490_vm1, %v1802_v22, 0.0  ;;  %873 = vmatpush.msra.mxu2 %v119_v13  ;;  %976 = vmatpush.msrb.mxu1 %v130_v28  ;;  %v134_v60 = vld [vmem:[#allocation7 + $0xa8] sm:$0xff] }
 0x14a   :  { %1333 = vpow2.f32 %v651_v30  ;;  %534 = vmax.xlane.f32.xlu2 %v533_v21  ;;  %v1810_v37 = vpop.eup %1331  ;;  %v615_v46 = vmul.f32 1.442695, %v589_v42  ;;  %907 = vmatpush.msra.mxu3 %v123_v17  ;;  %v132_v30 = vld [vmem:[#allocation7 + $0x98] sm:$0xff] }
 0x14b   :  { %1335 = vpow2.f32 %v657_v31  ;;  %v529_v16 = vpop.xlane.xlu0 %528  ;;  %v707_v8 = vsel %vm490_vm1, %v1810_v37, 0.0  ;;  %1011 = vmatpush.msrb.mxu2 %v133_v61  ;;  %v136_v31 = vld [vmem:[#allocation7 + $0xb8] sm:$0xff] }
 0x14c   :  { %717 = vadd.xlane.f32.xlu0 %v716_v2  ;;  %726 = vadd.xlane.f32.xlu1 %v725_v33  ;;  %v575_v36 = vsub.f32 %v1714_v26, %v529_v16  ;;  %1337 = vpow2.f32 %v613_v6  ;;  %v129_v2 = vld [vmem:[#allocation7 + $0x80] sm:$0xff]  ;;  %v131_v33 = vld [vmem:[#allocation7 + $0x90] sm:$0xff] }
 0x14d   :  { %1339 = vpow2.f32 %v611_v34  ;;  %908 = vmatpush.msra.mxu3 %v122_v18  ;;  %1012 = vmatpush.msrb.mxu2 %v132_v30  ;;  %v135_v6 = vld [vmem:[#allocation7 + $0xb0] sm:$0xff]  ;;  %v128_v34 = vld [vmem:[#allocation7 + $0x78] sm:$0xff] }
 0x14e   :  { %1341 = vpow2.f32 %v645_v35  ;;  %v599_v44 = vmul.f32 0.17677669, %v575_v36  ;;  %977 = vmatpush.msrb.mxu1 %v129_v2 }
 0x14f   :  { %1343 = vpow2.f32 %v615_v46  ;;  %1046 = vmatpush.msrb.mxu3 %v136_v31  ;;  %1013 = vmatpush.msrb.mxu2 %v131_v33  ;;  %v127_v33 = vld [vmem:[#allocation7 + $0x70] sm:$0xff] }
 0x150   :  { %v1812_v38 = vpop.eup %1333  ;;  %v635_v3 = vmul.f32 1.442695, %v599_v44  ;;  %978 = vmatpush.msrb.mxu1 %v128_v34 }
 0x151   :  { %v1814_v41 = vpop.eup %1335  ;;  %v719_v19 = vsel %vm490_vm1, %v1812_v38, 0.0  ;;  %1047 = vmatpush.msrb.mxu3 %v135_v6  ;;  %v126_v6 = vld [vmem:[#allocation7 + $0x68] sm:$0xff] }
 0x152   :  { %708 = vadd.xlane.f32.xlu2 %v707_v8  ;;  %v728_v26 = vsel %vm490_vm1, %v1814_v41, 0.0  ;;  %v1822_v12 = vpop.eup %1337  ;;  %1345 = vpow2.f32 %v635_v3 }
 0x153   :  { %v1824_v47 = vpop.eup %1339  ;;  %v662_v54 = vsel %vm490_vm1, %v1822_v12, 0.0  ;;  %1048 = vmatpush.msrb.mxu3 %v134_v60 }
 0x154   :  { %720 = vadd.xlane.f32.xlu0 %v719_v19  ;;  %729 = vadd.xlane.f32.xlu1 %v728_v26  ;;  %v1826_v48 = vpop.eup %1341  ;;  %v659_v51 = vsel %vm490_vm1, %v1824_v47, 0.0 }
 0x155   :  { %v710_v52 = vsel %vm490_vm1, %v1826_v48, 0.0  ;;  %v1834_v57 = vpop.eup %1343 }
 0x156   :  { %v665_v55 = vsel %vm490_vm1, %v1834_v57, 0.0 }
 0x158   :  { %v1836_v58 = vpop.eup %1345 }
 0x159   :  { %v695_v1 = vsel %vm490_vm1, %v1836_v58, 0.0 }
 0x15a   :  { %660 = vadd.xlane.f32.xlu2 %v659_v51 }
 0x15c   :  { %711 = vadd.xlane.f32.xlu0 %v710_v52  ;;  %663 = vadd.xlane.f32.xlu1 %v662_v54 }
 0x162   :  { %666 = vadd.xlane.f32.xlu2 %v665_v55 }
 0x164   :  { %696 = vadd.xlane.f32.xlu0 %v695_v1 }
 0x18f   :  { %v670_v20 = vpop.xlane.xlu1 %669 }
 0x190   :  { %1347 = vrcp.f32 %v670_v20 }
 0x195   :  { %v679_v24 = vpop.xlane.xlu2 %678 }
 0x196   :  { %v1348_v25 = vpop.eup %1347  ;;  %1349 = vrcp.f32 %v679_v24 }
 0x197   :  { %v758_v21 = vmul.f32 %v1348_v25, %v1721_v39 }
 0x199   :  { %1062 = vst.msk [vmem:[#allocation9 + $0x18] sm:$0xff] %vm490_vm1, %v758_v21  ;;  %1270 = vmatmul.msk.f32.vlgmr.msra.gmra.mxu1 %vm490_vm1, %v758_v21 }
 0x19c   :  { %v1350_v32 = vpop.eup %1349 }
 0x19d   :  { %v761_v53 = vmul.f32 %v1350_v32, %v1728_v49  ;;  %v673_v56 = vpop.xlane.xlu2 %672  ;;  %v688_v16 = vpop.xlane.xlu0 %687 }
 0x19e   :  { %1351 = vrcp.f32 %v673_v56 }
 0x19f   :  { %1065 = vst.msk [vmem:[#allocation9 + $0x30] sm:$0xff] %vm490_vm1, %v761_v53  ;;  %1353 = vrcp.f32 %v688_v16  ;;  %v691_v39 = vpop.xlane.xlu1 %690  ;;  %1273 = vmatmul.msk.f32.vlgmr.msra.gmra.mxu2 %vm490_vm1, %v761_v53 }
 0x1a0   :  { %1355 = vrcp.f32 %v691_v39  ;;  %v125_v39 = vld [vmem:[#allocation7 + $0x60] sm:$0xff] }
 0x1a4   :  { %v1352_v49 = vpop.eup %1351 }
 0x1a5   :  { %v1354_v35 = vpop.eup %1353  ;;  %v682_v36 = vpop.xlane.xlu0 %681  ;;  %v759_v42 = vmul.f32 %v1352_v49, %v1737_v63 }
 0x1a6   :  { %v1356_v44 = vpop.eup %1355  ;;  %v764_v8 = vmul.f32 %v1354_v35, %v1739_v4  ;;  %1357 = vrcp.f32 %v682_v36 }
 0x1a7   :  { %v685_v19 = vpop.xlane.xlu1 %684  ;;  %1271 = vmatmul.msk.f32.gmra.mxu1 %vm490_vm1, %v759_v42  ;;  %1063 = vst.msk [vmem:[#allocation9 + $0x20] sm:$0xff] %vm490_vm1, %v759_v42  ;;  %v765_v26 = vmul.f32 %v1356_v44, %v1745_v11 }
 0x1a8   :  { %1068 = vst.msk [vmem:[#allocation9 + $0x48] sm:$0xff] %vm490_vm1, %v764_v8  ;;  %1359 = vrcp.f32 %v685_v19  ;;  %1276 = vmatmul.msk.f32.vlgmr.msra.gmra.mxu3 %vm490_vm1, %v764_v8 }
 0x1a9   :  { %1069 = vst.msk [vmem:[#allocation9 + $0x50] sm:$0xff] %vm490_vm1, %v765_v26 }
 0x1ac   :  { %v1358_v46 = vpop.eup %1357 }
 0x1ad   :  { %v762_v63 = vmul.f32 %v1358_v46, %v1751_v23  ;;  %v694_v4 = vpop.xlane.xlu2 %693  ;;  %v115_v23 = vld [vmem:[#allocation7 + $0x10] sm:$0xff] }
 0x1ae   :  { %v1360_v3 = vpop.eup %1359  ;;  %1361 = vrcp.f32 %v694_v4  ;;  %801 = vmatpush.msra.mxu0 %v115_v23 }
 0x1af   :  { %1274 = vmatmul.msk.f32.gmra.mxu2 %vm490_vm1, %v762_v63  ;;  %1066 = vst.msk [vmem:[#allocation9 + $0x38] sm:$0xff] %vm490_vm1, %v762_v63  ;;  %v676_v51 = vpop.xlane.xlu0 %675  ;;  %v532_v52 = vpop.xlane.xlu1 %531  ;;  %v763_v11 = vmul.f32 %v1360_v3, %v1754_v27  ;;  %v113_v27 = vld [vmem:[#allocation7] sm:$0xff] }
 0x1b0   :  { %1277 = vmatmul.msk.f32.gmra.mxu3 %vm490_vm1, %v765_v26  ;;  %1363 = vrcp.f32 %v676_v51  ;;  %v576_v54 = vsub.f32 %v1763_v40, %v532_v52  ;;  %802 = vmatpush.msra.mxu0 %v114_v7 }
 0x1b1   :  { %1067 = vst.msk [vmem:[#allocation9 + $0x40] sm:$0xff] %vm490_vm1, %v763_v11 }
 0x1b2   :  { %v600_v55 = vmul.f32 0.17677669, %v576_v54  ;;  %803 = vmatpush.msra.mxu0 %v113_v27 }
 0x1b4   :  { %v637_v1 = vmul.f32 1.442695, %v600_v55  ;;  %v1362_v14 = vpop.eup %1361  ;;  %941 = vmatpush.msrb.mxu0 %v127_v33 }
 0x1b5   :  { %v715_v0 = vpop.xlane.xlu2 %714  ;;  %v766_v9 = vmul.f32 %v1362_v14, %v1765_v43 }
 0x1b6   :  { %v1364_v10 = vpop.eup %1363  ;;  %1365 = vpow2.f32 %v637_v1  ;;  %942 = vmatpush.msrb.mxu0 %v126_v6 }
 0x1b7   :  { %1367 = vrcp.f32 %v715_v0  ;;  %1275 = vmatmul.msk.f32.gmra.mxu2 %vm490_vm1, %v763_v11  ;;  %v724_v13 = vpop.xlane.xlu0 %723  ;;  %v706_v40 = vpop.xlane.xlu1 %705  ;;  %v760_v15 = vmul.f32 %v1364_v10, %v1769_v45  ;;  %1070 = vst.msk [vmem:[#allocation9 + $0x58] sm:$0xff] %vm490_vm1, %v766_v9 }
 0x1b8   :  { %1278 = vmatmul.msk.f32.gmra.mxu3 %vm490_vm1, %v766_v9  ;;  %1369 = vrcp.f32 %v724_v13  ;;  %943 = vmatpush.msrb.mxu0 %v125_v39 }
 0x1b9   :  { %1371 = vrcp.f32 %v706_v40  ;;  %1272 = vmatmul.msk.f32.gmra.mxu1 %vm490_vm1, %v760_v15  ;;  %1064 = vst.msk [vmem:[#allocation9 + $0x28] sm:$0xff] %vm490_vm1, %v760_v15 }
 0x1bc   :  { %v1870_v43 = vpop.eup %1365 }
 0x1bd   :  { %v1368_v17 = vpop.eup %1367  ;;  %v698_v18 = vsel %vm490_vm1, %v1870_v43, 0.0  ;;  %v535_v20 = vpop.xlane.xlu2 %534 }
 0x1be   :  { %v1370_v61 = vpop.eup %1369  ;;  %v773_v45 = vmul.f32 %v1368_v17, %v1777_v50  ;;  %699 = vadd.xlane.f32.xlu1 %v698_v18  ;;  %v577_v28 = vsub.f32 %v1795_v59, %v535_v20 }
 0x1bf   :  { %v1372_v24 = vpop.eup %1371  ;;  %v776_v25 = vmul.f32 %v1370_v61, %v1779_v62  ;;  %v718_v30 = vpop.xlane.xlu0 %717 }
 0x1c0   :  { %v727_v31 = vpop.xlane.xlu1 %726  ;;  %1077 = vst.msk [vmem:[#allocation9 + $0x90] sm:$0xff] %vm490_vm1, %v773_v45  ;;  %v770_v21 = vmul.f32 %v1372_v24, %v1781_v5  ;;  %1285 = vmatmul.msk.f32.vlgmr.msrb.gmra.mxu2 %vm490_vm1, %v773_v45  ;;  %1373 = vrcp.f32 %v718_v30  ;;  %v601_v32 = vmul.f32 0.17677669, %v577_v28 }
 0x1c1   :  { %1080 = vst.msk [vmem:[#allocation9 + $0xa8] sm:$0xff] %vm490_vm1, %v776_v25  ;;  %1375 = vrcp.f32 %v727_v31  ;;  %1288 = vmatmul.msk.f32.vlgmr.msrb.gmra.mxu3 %vm490_vm1, %v776_v25 }
 0x1c2   :  { %1074 = vst.msk [vmem:[#allocation9 + $0x78] sm:$0xff] %vm490_vm1, %v770_v21  ;;  %1282 = vmatmul.msk.f32.vlgmr.msrb.gmra.mxu1 %vm490_vm1, %v770_v21  ;;  %v639_v50 = vmul.f32 1.442695, %v601_v32 }
 0x1c4   :  { %1377 = vpow2.f32 %v639_v50 }
 0x1c5   :  { %v709_v59 = vpop.xlane.xlu2 %708 }
 0x1c6   :  { %v1374_v62 = vpop.eup %1373  ;;  %1379 = vrcp.f32 %v709_v59 }
 0x1c7   :  { %v1376_v53 = vpop.eup %1375  ;;  %v721_v5 = vpop.xlane.xlu0 %720  ;;  %v774_v16 = vmul.f32 %v1374_v62, %v1798_v29 }
 0x1c8   :  { %v730_v56 = vpop.xlane.xlu1 %729  ;;  %1381 = vrcp.f32 %v721_v5  ;;  %v777_v2 = vmul.f32 %v1376_v53, %v1802_v22 }
 0x1c9   :  { %1383 = vrcp.f32 %v730_v56  ;;  %1286 = vmatmul.msk.f32.gmra.mxu2 %vm490_vm1, %v774_v16  ;;  %1078 = vst.msk [vmem:[#allocation9 + $0x98] sm:$0xff] %vm490_vm1, %v774_v16 }
 0x1ca   :  { %1289 = vmatmul.msk.f32.gmra.mxu3 %vm490_vm1, %v777_v2  ;;  %1081 = vst.msk [vmem:[#allocation9 + $0xb0] sm:$0xff] %vm490_vm1, %v777_v2  ;;  %v1890_v34 = vpop.eup %1377 }
 0x1cb   :  { %v701_v29 = vsel %vm490_vm1, %v1890_v34, 0.0 }
 0x1cc   :  { %v1380_v22 = vpop.eup %1379  ;;  %702 = vadd.xlane.f32.xlu2 %v701_v29 }
 0x1cd   :  { %v661_v49 = vpop.xlane.xlu2 %660  ;;  %v771_v35 = vmul.f32 %v1380_v22, %v1810_v37 }
 0x1ce   :  { %v1382_v60 = vpop.eup %1381  ;;  %1385 = vrcp.f32 %v661_v49 }
 0x1cf   :  { %v1384_v36 = vpop.eup %1383  ;;  %v712_v42 = vpop.xlane.xlu0 %711  ;;  %v775_v8 = vmul.f32 %v1382_v60, %v1812_v38  ;;  %1283 = vmatmul.msk.f32.gmra.mxu1 %vm490_vm1, %v771_v35  ;;  %1075 = vst.msk [vmem:[#allocation9 + $0x80] sm:$0xff] %vm490_vm1, %v771_v35 }
 0x1d0   :  { %v664_v44 = vpop.xlane.xlu1 %663  ;;  %1387 = vrcp.f32 %v712_v42  ;;  %v778_v19 = vmul.f32 %v1384_v36, %v1814_v41 }
 0x1d1   :  { %1389 = vrcp.f32 %v664_v44  ;;  %1287 = vmatmul.msk.f32.gmra.mxu2 %vm490_vm1, %v775_v8  ;;  %1079 = vst.msk [vmem:[#allocation9 + $0xa0] sm:$0xff] %vm490_vm1, %v775_v8 }
 0x1d2   :  { %1290 = vmatmul.msk.f32.gmra.mxu3 %vm490_vm1, %v778_v19  ;;  %1082 = vst.msk [vmem:[#allocation9 + $0xb8] sm:$0xff] %vm490_vm1, %v778_v19 }
 0x1d4   :  { %v1386_v37 = vpop.eup %1385 }
 0x1d5   :  { %v755_v38 = vmul.f32 %v1386_v37, %v1824_v47  ;;  %v667_v46 = vpop.xlane.xlu2 %666 }
 0x1d6   :  { %v1388_v26 = vpop.eup %1387  ;;  %1391 = vrcp.f32 %v667_v46 }
 0x1d7   :  { %v1390_v63 = vpop.eup %1389  ;;  %v697_v3 = vpop.xlane.xlu0 %696  ;;  %v772_v4 = vmul.f32 %v1388_v26, %v1826_v48  ;;  %1059 = vst.msk [vmem:[#allocation9] sm:$0xff] %vm490_vm1, %v755_v38  ;;  %1267 = vmatmul.msk.f32.vlgmr.msra.gmra.mxu0 %vm490_vm1, %v755_v38 }
 0x1d8   :  { %1393 = vrcp.f32 %v697_v3  ;;  %v756_v41 = vmul.f32 %v1390_v63, %v1822_v12 }
 0x1d9   :  { %1284 = vmatmul.msk.f32.gmra.mxu1 %vm490_vm1, %v772_v4  ;;  %1076 = vst.msk [vmem:[#allocation9 + $0x88] sm:$0xff] %vm490_vm1, %v772_v4 }
 0x1da   :  { %1060 = vst.msk [vmem:[#allocation9 + $0x8] sm:$0xff] %vm490_vm1, %v756_v41 }
 0x1dc   :  { %v1392_v47 = vpop.eup %1391 }
 0x1dd   :  { %v757_v52 = vmul.f32 %v1392_v47, %v1834_v57 }
 0x1de   :  { %v1394_v51 = vpop.eup %1393 }
 0x1df   :  { %v767_v11 = vmul.f32 %v1394_v51, %v1836_v58  ;;  %1268 = vmatmul.msk.f32.gmra.mxu0 %vm490_vm1, %v756_v41  ;;  %1061 = vst.msk [vmem:[#allocation9 + $0x10] sm:$0xff] %vm490_vm1, %v757_v52 }
 0x1e1   :  { %1071 = vst.msk [vmem:[#allocation9 + $0x60] sm:$0xff] %vm490_vm1, %v767_v11 }
 0x1e7   :  { %1269 = vmatmul.msk.f32.gmra.mxu0 %vm490_vm1, %v757_v52 }
 0x1ef   :  { %1279 = vmatmul.msk.f32.vlgmr.msrb.gmra.mxu0 %vm490_vm1, %v767_v11 }
 0x216   :  { %v840_v12 = vpop.f32.mrf.mxu1 }
 0x217   :  { %1086 = vrot.lane.b32.xlu0 %v840_v12, %s1532_s2 }
 0x222   :  { %v875_v48 = vpop.f32.mrf.mxu2 }
 0x223   :  { %1098 = vrot.lane.b32.xlu0 %v875_v48, %s1533_s30 }
 0x224   :  { %v843_v57 = vpop.f32.mrf.mxu1 }
 0x225   :  { %1088 = vrot.lane.b32.xlu1 %v843_v57, %s1532_s2 }
 0x22b   :  { %v910_v58 = vpop.f32.mrf.mxu3 }
 0x22c   :  { %1110 = vrot.lane.b32.xlu0 %v910_v58, %s1534_s5 }
 0x231   :  { %v700_v54 = vpop.xlane.xlu1 %699 }
 0x232   :  { %1395 = vrcp.f32 %v700_v54  ;;  %v878_v55 = vpop.f32.mrf.mxu2 }
 0x233   :  { %v913_v1 = vpop.f32.mrf.mxu3 }
 0x236   :  { %v846_v23 = vpop.f32.mrf.mxu1 }
 0x237   :  { %1090 = vrot.lane.b32.xlu2 %v846_v23, %s1532_s2 }
 0x238   :  { %v1396_v7 = vpop.eup %1395 }
 0x239   :  { %v768_v14 = vmul.f32 %v1396_v7, %v1870_v43 }
 0x23a   :  { %v881_v10 = vpop.f32.mrf.mxu2 }
 0x23b   :  { %1102 = vrot.lane.b32.xlu1 %v881_v10, %s1533_s30  ;;  %1280 = vmatmul.msk.f32.gmra.mxu0 %vm490_vm1, %v768_v14  ;;  %1072 = vst.msk [vmem:[#allocation9 + $0x68] sm:$0xff] %vm490_vm1, %v768_v14  ;;  %v916_v9 = vpop.f32.mrf.mxu3 }
 0x23f   :  { %1100 = vrot.lane.b32.xlu2 %v878_v55, %s1533_s30  ;;  %v703_v0 = vpop.xlane.xlu2 %702  ;;  %v980_v13 = vpop.f32.mrf.mxu1 }
 0x240   :  { %1397 = vrcp.f32 %v703_v0 }
 0x243   :  { %v1015_v27 = vpop.f32.mrf.mxu2  ;;  %1114 = vrot.lane.b32.xlu1 %v916_v9, %s1534_s5 }
 0x244   :  { %1134 = vrot.lane.b32.xlu0 %v1015_v27, %s1533_s30  ;;  %v1050_v43 = vpop.f32.mrf.mxu3 }
 0x246   :  { %v1398_v40 = vpop.eup %1397 }
 0x247   :  { %1112 = vrot.lane.b32.xlu2 %v913_v1, %s1534_s5  ;;  %v769_v15 = vmul.f32 %v1398_v40, %v1890_v34 }
 0x249   :  { %1281 = vmatmul.msk.f32.gmra.mxu0 %vm490_vm1, %v769_v15  ;;  %1073 = vst.msk [vmem:[#allocation9 + $0x70] sm:$0xff] %vm490_vm1, %v769_v15 }
 0x24a   :  { %1206 = dma.vmem_to_hbm [thread:$0]  %s1199_s7, 3072, %s1201_s10, [#allocation10], %s1528_s23, %s1528_s23, %s1529_s24  }
 0x24c   :  { %v1018_v17 = vpop.f32.mrf.mxu2  ;;  %v983_v18 = vpop.f32.mrf.mxu1 }
 0x24d   :  { %1124 = vrot.lane.b32.xlu1 %v983_v18, %s1532_s2  ;;  %v1053_v61 = vpop.f32.mrf.mxu3 }
 0x24f   :  { %1122 = vrot.lane.b32.xlu2 %v980_v13, %s1532_s2 }
 0x254   :  { %v1021_v45 = vpop.f32.mrf.mxu2  ;;  %v805_v30 = vpop.f32.mrf.mxu0 }
 0x255   :  { %1138 = vrot.lane.b32.xlu1 %v1021_v45, %s1533_s30  ;;  %v1056_v24 = vpop.f32.mrf.mxu3 }
 0x256   :  { %v986_v20 = vpop.f32.mrf.mxu1 }
 0x257   :  { %1136 = vrot.lane.b32.xlu2 %v1018_v17, %s1533_s30  ;;  %1126 = vrot.lane.b32.xlu0 %v986_v20, %s1532_s2 }
 0x25c   :  { %v808_v50 = vpop.f32.mrf.mxu0 }
 0x25d   :  { %1150 = vrot.lane.b32.xlu1 %v1056_v24, %s1534_s5 }
 0x25f   :  { %1148 = vrot.lane.b32.xlu2 %v1053_v61, %s1534_s5  ;;  %1146 = vrot.lane.b32.xlu0 %v1050_v43, %s1534_s5 }
 0x264   :  { %v811_v39 = vpop.f32.mrf.mxu0 }
 0x26c   :  { %v945_v35 = vpop.f32.mrf.mxu0 }
 0x289   :  { %v1087_v25 = vpop.permute.xlu0 %1086 }
 0x28a   :  { %v1155_v62 = vsel %vm137_vm0, %v805_v30, %v1087_v25 }
 0x291   :  { %v1091_v28 = vpop.permute.xlu2 %1090 }
 0x292   :  { %v1157_v29 = vsel %vm137_vm0, %v811_v39, %v1091_v28 }
 0x295   :  { %v1099_v31 = vpop.permute.xlu0 %1098 }
 0x296   :  { %v1159_v59 = vsel %vm1158_vm2, %v1155_v62, %v1099_v31 }
 0x297   :  { %v1089_v32 = vpop.permute.xlu1 %1088 }
 0x298   :  { %v1156_v53 = vsel %vm137_vm0, %v808_v50, %v1089_v32 }
 0x299   :  { %v1101_v21 = vpop.permute.xlu2 %1100 }
 0x29a   :  { %v1160_v16 = vsel %vm1158_vm2, %v1156_v53, %v1101_v21 }
 0x29e   :  { %v1111_v5 = vpop.permute.xlu0 %1110 }
 0x29f   :  { %v1163_v56 = vsel %vm1162_vm3, %v1159_v59, %v1111_v5 }
 0x2a0   :  { %1175 = vst [vmem:[#allocation8] sm:$0xff] %v1163_v56 }
 0x2a1   :  { %v1113_v2 = vpop.permute.xlu2 %1112 }
 0x2a2   :  { %v1164_v33 = vsel %vm1162_vm3, %v1160_v16, %v1113_v2 }
 0x2a3   :  { %1177 = vst [vmem:[#allocation8 + $0x10] sm:$0xff] %v1164_v33 }
 0x2a9   :  { %v1123_v34 = vpop.permute.xlu2 %1122 }
 0x2aa   :  { %v1166_v41 = vsel %vm137_vm0, %v945_v35, %v1123_v34 }
 0x2ad   :  { %v1103_v6 = vpop.permute.xlu1 %1102 }
 0x2ae   :  { %v1161_v22 = vsel %vm1158_vm2, %v1157_v29, %v1103_v6 }
 0x2b1   :  { %v1137_v36 = vpop.permute.xlu2 %1136 }
 0x2b5   :  { %v1115_v60 = vpop.permute.xlu1 %1114 }
 0x2b6   :  { %v1165_v49 = vsel %vm1162_vm3, %v1161_v22, %v1115_v60  ;;  %v1135_v8 = vpop.permute.xlu0 %1134 }
 0x2b7   :  { %1179 = vst [vmem:[#allocation8 + $0x20] sm:$0xff] %v1165_v49  ;;  %v1169_v52 = vsel %vm1158_vm2, %v1166_v41, %v1135_v8 }
 0x2b8   :  { %v948_v42 = vpop.f32.mrf.mxu0 }
 0x2b9   :  { %v1149_v37 = vpop.permute.xlu2 %1148 }
 0x2bf   :  { %v1125_v44 = vpop.permute.xlu1 %1124 }
 0x2c0   :  { %v1167_v19 = vsel %vm137_vm0, %v948_v42, %v1125_v44 }
 0x2c1   :  { %v1170_v26 = vsel %vm1158_vm2, %v1167_v19, %v1137_v36 }
 0x2c2   :  { %v1173_v38 = vsel %vm1162_vm3, %v1170_v26, %v1149_v37 }
 0x2c3   :  { %1178 = vst [vmem:[#allocation8 + $0x18] sm:$0xff] %v1173_v38 }
 0x2c6   :  { %v951_v3 = vpop.f32.mrf.mxu0 }
 0x2c7   :  { %v1139_v46 = vpop.permute.xlu1 %1138 }
 0x2c9   :  { %v1127_v63 = vpop.permute.xlu0 %1126 }
 0x2ca   :  { %v1168_v4 = vsel %vm137_vm0, %v951_v3, %v1127_v63 }
 0x2cb   :  { %v1171_v51 = vsel %vm1158_vm2, %v1168_v4, %v1139_v46 }
 0x2cf   :  { %v1151_v47 = vpop.permute.xlu1 %1150 }
 0x2d0   :  { %v1174_v11 = vsel %vm1162_vm3, %v1171_v51, %v1151_v47 }
 0x2d1   :  { %v1147_v12 = vpop.permute.xlu0 %1146  ;;  %1180 = vst [vmem:[#allocation8 + $0x28] sm:$0xff] %v1174_v11 }
 0x2d2   :  { %v1172_v48 = vsel %vm1162_vm3, %v1169_v52, %v1147_v12 }
 0x2d3   :  { %1176 = vst [vmem:[#allocation8 + $0x8] sm:$0xff] %v1172_v48 }
 0x2d4   :  { %1193 = dma.vmem_to_hbm [thread:$0]  %s1186_s11, 768, %s1188_s14, [#allocation4], %s1537_s15, %s1537_s15, %s1538_s16  }
 0x2d5   :  { %1523 = dma.done.wait [#allocation4], 768  }
 0x2d6   :  { %1524 = vsyncadd [#allocation4], 4294966528 }
 0x2d7   :  { %1525 = dma.done.wait [#allocation10], 3072  }
 0x2d8   :  { %1526 = vsyncadd [#allocation10], 4294964224 }
 0x2d9   :  { %1215 = vsyncpa [#allocation3], 1 }
 0x2da   :  { %1216 = vsyncpa [#allocation6], 1 }
 0x2db   :  { %1217 = vsyncpa [#allocation4], 1 }
 0x2dc   :  { %1218 = vsyncpa [#allocation10], 1 }

</bundles_post_ra>
